<compile_context>
chip_gen: v7x
topology: tpu7x:2x2x1
jax: 0.10.0
libtpu: 0.0.40
codegen_flags: <defaults>
</compile_context>

<pallas_src>
import jax
import jax.numpy as jnp
from jax.experimental import pallas as pl
from jax.experimental.pallas import tpu as pltpu


def _spectral_mul_kernel(xr_ref, xi_ref, wr_ref, wi_ref, or_ref, oi_ref):
    # xr/xi: (Bt, Cin, Mt)   wr/wi: (Cin, Cout, Mt)   or/oi: (Bt, Cout, Mt)
    Bt, Cin, Mt = xr_ref.shape
    Cout = wr_ref.shape[1]

    # Register blocking: chunk Cout (<=8 = one sublane tile) and the lane axis
    # so the two (Bt, CO, MI) accumulators stay vreg-resident across the whole
    # Cin reduction -- no accumulator VMEM round-trips on the vst slot.
    CO = next(c for c in (8, 4, 2, 1) if Cout % c == 0)
    MI = next(m for m in (512, 256, 128) if Mt % m == 0 and Bt * CO * m <= 8192)

    for co in range(0, Cout, CO):
        for ms in range(0, Mt, MI):

            def accumulate(i, carry, co=co, ms=ms):
                acc_r, acc_i = carry
                xr_i = xr_ref[:, pl.ds(i, 1), ms:ms + MI]            # (Bt, 1, MI)
                xi_i = xi_ref[:, pl.ds(i, 1), ms:ms + MI]
                wr_i = wr_ref[pl.ds(i, 1), co:co + CO, ms:ms + MI]   # (1, CO, MI)
                wi_i = wi_ref[pl.ds(i, 1), co:co + CO, ms:ms + MI]
                # Plain 4-multiply complex product (Karatsuba dropped: its third
                # weight stream costs more bandwidth than the saved multiply).
                acc_r = acc_r + (xr_i * wr_i - xi_i * wi_i)
                acc_i = acc_i + (xr_i * wi_i + xi_i * wr_i)
                return acc_r, acc_i

            zeros = jnp.zeros((Bt, CO, MI), jnp.float32)
            if Cin < 32:
                # Small channel counts: full static unroll (best LLO scheduling).
                acc_r, acc_i = zeros, zeros
                for i in range(Cin):
                    acc_r, acc_i = accumulate(i, (acc_r, acc_i))
            else:
                # Wide layers: bounded trace size, vreg-resident loop carry.
                acc_r, acc_i = jax.lax.fori_loop(
                    0, Cin, accumulate, (zeros, zeros), unroll=4)

            or_ref[:, co:co + CO, ms:ms + MI] = acc_r
            oi_ref[:, co:co + CO, ms:ms + MI] = acc_i


def _vmem_budget_bytes():
    """~85% of the physical VMEM (respects v7x's 64 MiB), with a safe fallback."""
    try:
        cap = pltpu.get_tpu_info().vmem_capacity_bytes
    except Exception:
        cap = 64 << 20  # conservative (v7x per-TensorCore VMEM)
    return int(cap * 0.85)


def _compl_mul2d_pallas(xr, xi, wr, wi):
    """xr/xi: (B, Cin, Mp) f32; wr/wi: (Cin, Cout, Mp) f32, Mp % 128 == 0.
    Returns (out_r, out_i), each (B, Cout, Mp) f32."""
    B, Cin, Mp = xr.shape
    Cout = wr.shape[1]

    budget = _vmem_budget_bytes()

    def tile_bytes(bt, mt):
        # x (2 streams) + w (2 streams) + out (2 streams), f32.
        return 4 * mt * (2 * bt * Cin + 2 * Cin * Cout + 2 * bt * Cout)

    mt_candidates = [m for m in (512, 256, 128) if Mp % m == 0]
    bt_candidates = [b for b in (8, 4, 2, 1) if B % b == 0]

    # Largest tile whose double-buffered footprint fits ~75% of the budget.
    Mt, Bt = mt_candidates[-1], bt_candidates[-1]
    found = False
    for m in mt_candidates:
        for b in bt_candidates:
            if 2 * tile_bytes(b, m) <= int(0.75 * budget):
                Mt, Bt = m, b
                found = True
                break
        if found:
            break
    # TODO(synk): for very wide layers (Cin*Cout so large even the minimal tile
    # overruns VMEM) add an "arbitrary" Cin grid axis with VMEM scratch
    # accumulators and pl.when init/finalize.

    vmem_limit = int(min(budget, max(4 * tile_bytes(Bt, Mt) + (2 << 20), 16 << 20)))

    # B-tile innermost: the weight block index is constant across consecutive
    # steps, so Pallas skips re-copying the (Cin, Cout, Mt) weight tiles.
    grid = (Mp // Mt, B // Bt)

    x_spec = pl.BlockSpec((Bt, Cin, Mt), lambda m, b: (b, 0, m))
    w_spec = pl.BlockSpec((Cin, Cout, Mt), lambda m, b: (0, 0, m))
    o_spec = pl.BlockSpec((Bt, Cout, Mt), lambda m, b: (b, 0, m))

    flops = 8 * B * Cin * Cout * Mp
    bytes_accessed = 4 * Mp * (2 * B * Cin + 2 * Cin * Cout + 2 * B * Cout)

    out_r, out_i = pl.pallas_call(
        _spectral_mul_kernel,
        out_shape=(
            jax.ShapeDtypeStruct((B, Cout, Mp), jnp.float32),
            jax.ShapeDtypeStruct((B, Cout, Mp), jnp.float32),
        ),
        grid_spec=pltpu.PrefetchScalarGridSpec(
            num_scalar_prefetch=0,
            grid=grid,
            in_specs=[x_spec, x_spec, w_spec, w_spec],
            out_specs=[o_spec, o_spec],
        ),
        compiler_params=pltpu.CompilerParams(
            dimension_semantics=("parallel", "parallel"),
            vmem_limit_bytes=vmem_limit),
        cost_estimate=pl.CostEstimate(flops=flops, transcendentals=0,
                                      bytes_accessed=bytes_accessed),
    )(xr, xi, wr, wi)
    return out_r, out_i


def spectral_conv2d(x, weights1, weights2, modes1, modes2):
    """x: (B, Cin, H, W) float32.  weights: (Cin, Cout, modes1, modes2) complex64."""
    B, Cin, H, W = x.shape
    Cout = weights1.shape[1]
    Wf = W // 2 + 1

    # TODO(synk): rfft2 / irfft2 have no clean Pallas equivalent; keep in JAX.
    x_ft = jnp.fft.rfft2(x)                                  # (B, Cin, H, Wf)

    # Fold the low/high retained-mode blocks into one flattened M axis and pad
    # once to a multiple of 128 (lane-dense, minimal padding waste).
    M = modes1 * modes2
    M2 = 2 * M
    Mp = ((M2 + 127) // 128) * 128
    pad3 = ((0, 0), (0, 0), (0, Mp - M2))

    x_low = x_ft[:, :, :modes1, :modes2].reshape(B, Cin, M)
    x_high = x_ft[:, :, H - modes1:, :modes2].reshape(B, Cin, M)
    x_cat = jnp.concatenate([x_low, x_high], axis=-1)        # (B, Cin, 2M)
    xr = jnp.pad(jnp.real(x_cat).astype(jnp.float32), pad3)
    xi = jnp.pad(jnp.imag(x_cat).astype(jnp.float32), pad3)

    w_cat = jnp.concatenate([weights1.reshape(Cin, Cout, M),
                             weights2.reshape(Cin, Cout, M)], axis=-1)
    wr = jnp.pad(jnp.real(w_cat).astype(jnp.float32), pad3)
    wi = jnp.pad(jnp.imag(w_cat).astype(jnp.float32), pad3)

    out_r, out_i = _compl_mul2d_pallas(xr, xi, wr, wi)        # (B, Cout, Mp)
    out_c = jax.lax.complex(out_r[..., :M2], out_i[..., :M2])
    out_low = out_c[..., :M].reshape(B, Cout, modes1, modes2)
    out_high = out_c[..., M:].reshape(B, Cout, modes1, modes2)

    if 2 * modes1 <= H:
        # Assemble out_ft with concatenate/pad (no full-buffer scatter updates).
        mid = jnp.zeros((B, Cout, H - 2 * modes1, modes2), out_c.dtype)
        rows = jnp.concatenate([out_low, mid, out_high], axis=2)   # (B,Cout,H,m2)
        out_ft = jnp.pad(rows, ((0, 0), (0, 0), (0, 0), (0, Wf - modes2)))
    else:
        # Overlapping slices: keep PyTorch's "second write wins" semantics.
        out_ft = jnp.zeros((B, Cout, H, Wf), dtype=out_c.dtype)
        out_ft = out_ft.at[:, :, :modes1, :modes2].set(out_low)
        out_ft = out_ft.at[:, :, H - modes1:, :modes2].set(out_high)

    return jnp.fft.irfft2(out_ft, s=(H, W)).astype(x.dtype)


def init_spectral_conv2d_params(key, in_channels, out_channels, modes1, modes2):
    """Matches: scale * torch.rand(in, out, m1, m2, dtype=cfloat)."""
    scale = 1.0 / (in_channels * out_channels)
    k1r, k1i, k2r, k2i = jax.random.split(key, 4)
    shape = (in_channels, out_channels, modes1, modes2)
    w1 = scale * (jax.random.uniform(k1r, shape, jnp.float32)
                  + 1j * jax.random.uniform(k1i, shape, jnp.float32))
    w2 = scale * (jax.random.uniform(k2r, shape, jnp.float32)
                  + 1j * jax.random.uniform(k2i, shape, jnp.float32))
    return w1.astype(jnp.complex64), w2.astype(jnp.complex64)


def _reference_spectral_conv2d(x, weights1, weights2, modes1, modes2):
    """Pure-JAX reference (no Pallas) for correctness check."""
    B, Cin, H, W = x.shape
    Cout = weights1.shape[1]
    Wf = W // 2 + 1
    x_ft = jnp.fft.rfft2(x)
    out_ft = jnp.zeros((B, Cout, H, Wf), dtype=jnp.complex64)
    out_ft = out_ft.at[:, :, :modes1, :modes2].set(
        jnp.einsum('bixy,ioxy->boxy', x_ft[:, :, :modes1, :modes2], weights1))
    out_ft = out_ft.at[:, :, H - modes1:, :modes2].set(
        jnp.einsum('bixy,ioxy->boxy', x_ft[:, :, H - modes1:, :modes2], weights2))
    return jnp.fft.irfft2(out_ft, s=(H, W)).astype(x.dtype)


if __name__ == "__main__":
    key = jax.random.PRNGKey(0)
    k_x, k_w = jax.random.split(key)

    B, Cin, Cout = 2, 4, 4
    H = W = 16
    modes1 = modes2 = 8

    x = jax.random.normal(k_x, (B, Cin, H, W), dtype=jnp.float32)
    w1, w2 = init_spectral_conv2d_params(k_w, Cin, Cout, modes1, modes2)

    out = jax.block_until_ready(spectral_conv2d(x, w1, w2, modes1, modes2))
    ref = jax.block_until_ready(
        _reference_spectral_conv2d(x, w1, w2, modes1, modes2))

    assert out.shape == (B, Cout, H, W), out.shape
    assert jnp.allclose(out, ref, atol=1e-4, rtol=1e-4), "mismatch vs reference"
    print("KERNEL_OK")
</pallas_src>

<mosaic_0001>
module attributes {stable_mosaic.version = 11 : i64} {
  func.func @_spectral_mul_kernel(%arg0: i32, %arg1: i32, %arg2: memref<2x4x128xf32, #tpu.memory_space<vmem>>, %arg3: memref<2x4x128xf32, #tpu.memory_space<vmem>>, %arg4: memref<4x4x128xf32, #tpu.memory_space<vmem>>, %arg5: memref<4x4x128xf32, #tpu.memory_space<vmem>>, %arg6: memref<2x4x128xf32, #tpu.memory_space<vmem>>, %arg7: memref<2x4x128xf32, #tpu.memory_space<vmem>>) attributes {dimension_semantics = [#tpu.dimension_semantics<parallel>, #tpu.dimension_semantics<parallel>], iteration_bounds = array<i64: 1, 1>, scalar_prefetch = 0 : i64, scratch_operands = 0 : i64, tpu.core_type = #tpu.core_type<tc>, window_params = [{transform_indices = @transform_0, window_bounds = array<i64: 2, 4, 128>}, {transform_indices = @transform_1, window_bounds = array<i64: 2, 4, 128>}, {transform_indices = @transform_2, window_bounds = array<i64: 4, 4, 128>}, {transform_indices = @transform_3, window_bounds = array<i64: 4, 4, 128>}, {transform_indices = @transform_4, window_bounds = array<i64: 2, 4, 128>}, {transform_indices = @transform_5, window_bounds = array<i64: 2, 4, 128>}]} {
    %cst = arith.constant 0.000000e+00 : f32
    %0 = vector.broadcast %cst : f32 to vector<2x4x128xf32>
    %c0 = arith.constant 0 : index
    %c0_0 = arith.constant 0 : index
    %c0_1 = arith.constant 0 : index
    %1 = vector.load %arg2[%c0, %c0_0, %c0_1] : memref<2x4x128xf32, #tpu.memory_space<vmem>>, vector<2x1x128xf32>
    %c0_2 = arith.constant 0 : index
    %c0_3 = arith.constant 0 : index
    %c0_4 = arith.constant 0 : index
    %2 = vector.load %arg3[%c0_2, %c0_3, %c0_4] : memref<2x4x128xf32, #tpu.memory_space<vmem>>, vector<2x1x128xf32>
    %c0_5 = arith.constant 0 : index
    %c0_6 = arith.constant 0 : index
    %c0_7 = arith.constant 0 : index
    %3 = vector.load %arg4[%c0_5, %c0_6, %c0_7] : memref<4x4x128xf32, #tpu.memory_space<vmem>>, vector<1x4x128xf32>
    %c0_8 = arith.constant 0 : index
    %c0_9 = arith.constant 0 : index
    %c0_10 = arith.constant 0 : index
    %4 = vector.load %arg5[%c0_8, %c0_9, %c0_10] : memref<4x4x128xf32, #tpu.memory_space<vmem>>, vector<1x4x128xf32>
    %5 = vector.broadcast %1 : vector<2x1x128xf32> to vector<2x4x128xf32>
    %6 = vector.broadcast %3 : vector<1x4x128xf32> to vector<2x4x128xf32>
    %7 = arith.mulf %5, %6 : vector<2x4x128xf32>
    %8 = vector.broadcast %2 : vector<2x1x128xf32> to vector<2x4x128xf32>
    %9 = vector.broadcast %4 : vector<1x4x128xf32> to vector<2x4x128xf32>
    %10 = arith.mulf %8, %9 : vector<2x4x128xf32>
    %11 = arith.subf %7, %10 : vector<2x4x128xf32>
    %12 = arith.addf %0, %11 : vector<2x4x128xf32>
    %13 = vector.broadcast %1 : vector<2x1x128xf32> to vector<2x4x128xf32>
    %14 = vector.broadcast %4 : vector<1x4x128xf32> to vector<2x4x128xf32>
    %15 = arith.mulf %13, %14 : vector<2x4x128xf32>
    %16 = vector.broadcast %2 : vector<2x1x128xf32> to vector<2x4x128xf32>
    %17 = vector.broadcast %3 : vector<1x4x128xf32> to vector<2x4x128xf32>
    %18 = arith.mulf %16, %17 : vector<2x4x128xf32>
    %19 = arith.addf %15, %18 : vector<2x4x128xf32>
    %20 = arith.addf %0, %19 : vector<2x4x128xf32>
    %c0_11 = arith.constant 0 : index
    %c1 = arith.constant 1 : index
    %c0_12 = arith.constant 0 : index
    %21 = vector.load %arg2[%c0_11, %c1, %c0_12] : memref<2x4x128xf32, #tpu.memory_space<vmem>>, vector<2x1x128xf32>
    %c0_13 = arith.constant 0 : index
    %c1_14 = arith.constant 1 : index
    %c0_15 = arith.constant 0 : index
    %22 = vector.load %arg3[%c0_13, %c1_14, %c0_15] : memref<2x4x128xf32, #tpu.memory_space<vmem>>, vector<2x1x128xf32>
    %c1_16 = arith.constant 1 : index
    %c0_17 = arith.constant 0 : index
    %c0_18 = arith.constant 0 : index
    %23 = vector.load %arg4[%c1_16, %c0_17, %c0_18] : memref<4x4x128xf32, #tpu.memory_space<vmem>>, vector<1x4x128xf32>
    %c1_19 = arith.constant 1 : index
    %c0_20 = arith.constant 0 : index
    %c0_21 = arith.constant 0 : index
    %24 = vector.load %arg5[%c1_19, %c0_20, %c0_21] : memref<4x4x128xf32, #tpu.memory_space<vmem>>, vector<1x4x128xf32>
    %25 = vector.broadcast %21 : vector<2x1x128xf32> to vector<2x4x128xf32>
    %26 = vector.broadcast %23 : vector<1x4x128xf32> to vector<2x4x128xf32>
    %27 = arith.mulf %25, %26 : vector<2x4x128xf32>
    %28 = vector.broadcast %22 : vector<2x1x128xf32> to vector<2x4x128xf32>
    %29 = vector.broadcast %24 : vector<1x4x128xf32> to vector<2x4x128xf32>
    %30 = arith.mulf %28, %29 : vector<2x4x128xf32>
    %31 = arith.subf %27, %30 : vector<2x4x128xf32>
    %32 = arith.addf %12, %31 : vector<2x4x128xf32>
    %33 = vector.broadcast %21 : vector<2x1x128xf32> to vector<2x4x128xf32>
    %34 = vector.broadcast %24 : vector<1x4x128xf32> to vector<2x4x128xf32>
    %35 = arith.mulf %33, %34 : vector<2x4x128xf32>
    %36 = vector.broadcast %22 : vector<2x1x128xf32> to vector<2x4x128xf32>
    %37 = vector.broadcast %23 : vector<1x4x128xf32> to vector<2x4x128xf32>
    %38 = arith.mulf %36, %37 : vector<2x4x128xf32>
    %39 = arith.addf %35, %38 : vector<2x4x128xf32>
    %40 = arith.addf %20, %39 : vector<2x4x128xf32>
    %c0_22 = arith.constant 0 : index
    %c2 = arith.constant 2 : index
    %c0_23 = arith.constant 0 : index
    %41 = vector.load %arg2[%c0_22, %c2, %c0_23] : memref<2x4x128xf32, #tpu.memory_space<vmem>>, vector<2x1x128xf32>
    %c0_24 = arith.constant 0 : index
    %c2_25 = arith.constant 2 : index
    %c0_26 = arith.constant 0 : index
    %42 = vector.load %arg3[%c0_24, %c2_25, %c0_26] : memref<2x4x128xf32, #tpu.memory_space<vmem>>, vector<2x1x128xf32>
    %c2_27 = arith.constant 2 : index
    %c0_28 = arith.constant 0 : index
    %c0_29 = arith.constant 0 : index
    %43 = vector.load %arg4[%c2_27, %c0_28, %c0_29] : memref<4x4x128xf32, #tpu.memory_space<vmem>>, vector<1x4x128xf32>
    %c2_30 = arith.constant 2 : index
    %c0_31 = arith.constant 0 : index
    %c0_32 = arith.constant 0 : index
    %44 = vector.load %arg5[%c2_30, %c0_31, %c0_32] : memref<4x4x128xf32, #tpu.memory_space<vmem>>, vector<1x4x128xf32>
    %45 = vector.broadcast %41 : vector<2x1x128xf32> to vector<2x4x128xf32>
    %46 = vector.broadcast %43 : vector<1x4x128xf32> to vector<2x4x128xf32>
    %47 = arith.mulf %45, %46 : vector<2x4x128xf32>
    %48 = vector.broadcast %42 : vector<2x1x128xf32> to vector<2x4x128xf32>
    %49 = vector.broadcast %44 : vector<1x4x128xf32> to vector<2x4x128xf32>
    %50 = arith.mulf %48, %49 : vector<2x4x128xf32>
    %51 = arith.subf %47, %50 : vector<2x4x128xf32>
    %52 = arith.addf %32, %51 : vector<2x4x128xf32>
    %53 = vector.broadcast %41 : vector<2x1x128xf32> to vector<2x4x128xf32>
    %54 = vector.broadcast %44 : vector<1x4x128xf32> to vector<2x4x128xf32>
    %55 = arith.mulf %53, %54 : vector<2x4x128xf32>
    %56 = vector.broadcast %42 : vector<2x1x128xf32> to vector<2x4x128xf32>
    %57 = vector.broadcast %43 : vector<1x4x128xf32> to vector<2x4x128xf32>
    %58 = arith.mulf %56, %57 : vector<2x4x128xf32>
    %59 = arith.addf %55, %58 : vector<2x4x128xf32>
    %60 = arith.addf %40, %59 : vector<2x4x128xf32>
    %c0_33 = arith.constant 0 : index
    %c3 = arith.constant 3 : index
    %c0_34 = arith.constant 0 : index
    %61 = vector.load %arg2[%c0_33, %c3, %c0_34] : memref<2x4x128xf32, #tpu.memory_space<vmem>>, vector<2x1x128xf32>
    %c0_35 = arith.constant 0 : index
    %c3_36 = arith.constant 3 : index
    %c0_37 = arith.constant 0 : index
    %62 = vector.load %arg3[%c0_35, %c3_36, %c0_37] : memref<2x4x128xf32, #tpu.memory_space<vmem>>, vector<2x1x128xf32>
    %c3_38 = arith.constant 3 : index
    %c0_39 = arith.constant 0 : index
    %c0_40 = arith.constant 0 : index
    %63 = vector.load %arg4[%c3_38, %c0_39, %c0_40] : memref<4x4x128xf32, #tpu.memory_space<vmem>>, vector<1x4x128xf32>
    %c3_41 = arith.constant 3 : index
    %c0_42 = arith.constant 0 : index
    %c0_43 = arith.constant 0 : index
    %64 = vector.load %arg5[%c3_41, %c0_42, %c0_43] : memref<4x4x128xf32, #tpu.memory_space<vmem>>, vector<1x4x128xf32>
    %65 = vector.broadcast %61 : vector<2x1x128xf32> to vector<2x4x128xf32>
    %66 = vector.broadcast %63 : vector<1x4x128xf32> to vector<2x4x128xf32>
    %67 = arith.mulf %65, %66 : vector<2x4x128xf32>
    %68 = vector.broadcast %62 : vector<2x1x128xf32> to vector<2x4x128xf32>
    %69 = vector.broadcast %64 : vector<1x4x128xf32> to vector<2x4x128xf32>
    %70 = arith.mulf %68, %69 : vector<2x4x128xf32>
    %71 = arith.subf %67, %70 : vector<2x4x128xf32>
    %72 = arith.addf %52, %71 : vector<2x4x128xf32>
    %73 = vector.broadcast %61 : vector<2x1x128xf32> to vector<2x4x128xf32>
    %74 = vector.broadcast %64 : vector<1x4x128xf32> to vector<2x4x128xf32>
    %75 = arith.mulf %73, %74 : vector<2x4x128xf32>
    %76 = vector.broadcast %62 : vector<2x1x128xf32> to vector<2x4x128xf32>
    %77 = vector.broadcast %63 : vector<1x4x128xf32> to vector<2x4x128xf32>
    %78 = arith.mulf %76, %77 : vector<2x4x128xf32>
    %79 = arith.addf %75, %78 : vector<2x4x128xf32>
    %80 = arith.addf %60, %79 : vector<2x4x128xf32>
    %c0_44 = arith.constant 0 : index
    %c0_45 = arith.constant 0 : index
    %c0_46 = arith.constant 0 : index
    %81 = vector.load %arg6[%c0_44, %c0_45, %c0_46] : memref<2x4x128xf32, #tpu.memory_space<vmem>>, vector<2x4x128xf32>
    tpu.vector_store %arg6[%c0_44, %c0_45, %c0_46], %72 {strides = array<i32>} : memref<2x4x128xf32, #tpu.memory_space<vmem>>, vector<2x4x128xf32>,
    %c0_47 = arith.constant 0 : index
    %c0_48 = arith.constant 0 : index
    %c0_49 = arith.constant 0 : index
    %82 = vector.load %arg7[%c0_47, %c0_48, %c0_49] : memref<2x4x128xf32, #tpu.memory_space<vmem>>, vector<2x4x128xf32>
    tpu.vector_store %arg7[%c0_47, %c0_48, %c0_49], %80 {strides = array<i32>} : memref<2x4x128xf32, #tpu.memory_space<vmem>>, vector<2x4x128xf32>,
    return
  }
  func.func @transform_0(%arg0: i32, %arg1: i32) -> (i32, i32, i32) {
    %c0_i32 = arith.constant 0 : i32
    %c0_i32_0 = arith.constant 0 : i32
    return %arg1, %c0_i32, %arg0 : i32, i32, i32
  }
  func.func @transform_1(%arg0: i32, %arg1: i32) -> (i32, i32, i32) {
    %c0_i32 = arith.constant 0 : i32
    %c0_i32_0 = arith.constant 0 : i32
    return %arg1, %c0_i32, %arg0 : i32, i32, i32
  }
  func.func @transform_2(%arg0: i32, %arg1: i32) -> (i32, i32, i32) {
    %c0_i32 = arith.constant 0 : i32
    %c0_i32_0 = arith.constant 0 : i32
    %c0_i32_1 = arith.constant 0 : i32
    return %c0_i32, %c0_i32_0, %arg0 : i32, i32, i32
  }
  func.func @transform_3(%arg0: i32, %arg1: i32) -> (i32, i32, i32) {
    %c0_i32 = arith.constant 0 : i32
    %c0_i32_0 = arith.constant 0 : i32
    %c0_i32_1 = arith.constant 0 : i32
    return %c0_i32, %c0_i32_0, %arg0 : i32, i32, i32
  }
  func.func @transform_4(%arg0: i32, %arg1: i32) -> (i32, i32, i32) {
    %c0_i32 = arith.constant 0 : i32
    %c0_i32_0 = arith.constant 0 : i32
    return %arg1, %c0_i32, %arg0 : i32, i32, i32
  }
  func.func @transform_5(%arg0: i32, %arg1: i32) -> (i32, i32, i32) {
    %c0_i32 = arith.constant 0 : i32
    %c0_i32_0 = arith.constant 0 : i32
    return %arg1, %c0_i32, %arg0 : i32, i32, i32
  }
}

</mosaic_0001>

<bundles_post_ra>
// kernel: tpu_custom_call.1
= control target key start
LH: loop header
LB: loop body
LE: loop exit
PB: predicated region body
PF: predicated region fallthrough
CT: control target
= control target key end

     0   :  { %11 = vsyncpa [#allocation3], 0  ;;  %s593_s0 = inlined_call_operand.hbm [shape: f32[2,4,128], index: 0, kind: input, shape index: {}]   ;;  %s594_s1 = inlined_call_operand.hbm [shape: f32[2,4,128], index: 1, kind: input, shape index: {}]   ;;  %s595_s2 = inlined_call_operand.hbm [shape: f32[4,4,128], index: 2, kind: input, shape index: {}]   ;;  %s596_s3 = inlined_call_operand.hbm [shape: f32[4,4,128], index: 3, kind: input, shape index: {}]   ;;  %s597_s4 = inlined_call_operand.hbm [shape: f32[2,4,128], index: 4, kind: output, shape index: {0}]   ;;  %s598_s5 = inlined_call_operand.hbm [shape: f32[2,4,128], index: 5, kind: output, shape index: {1}]  }
   0x1   :  { %12 = vsyncpa [#allocation6], 0 }
   0x2   :  { %13 = vsyncpa [#allocation9], 0 }
   0x3   :  { %14 = vsyncpa [#allocation4], 0 }
   0x4   :  { %15 = vsyncpa [#allocation12], 0  ;;  %s439_s18 = smov [#allocation5]   ;;  %s440_s20 = smov [#allocation2]  }
   0x5   :  { %s33_s19 = sshll.u32 %s439_s18, 4  ;;  %s21_s21 = sshll.u32 %s440_s20, 4  ;;  %s34_s19 = int_to_ptr.vmem [resolvable:$true] %s33_s19  ;;  %s477_s21 = int_to_ptr.vmem [resolvable:$true] %s21_s21 }
   0x6   :  { %s297_s24 = scalar_lea.hbm %s594_s1, 128 }
   0x7   :  { %p298_p0 = scmp.ne.s32.totalorder %s594_s1, %s297_s24  ;;  %p301_p1 = scmp.lt.u32.totalorder %s297_s24, %s594_s1 }
   0x9   :  { %p303_p2 = pnand %p301_p1, %p298_p0 }
   0xb   :  { %306 = shalt.err (!%p303_p2)
}
   0xc   :  { %s307_s29 = scalar_lea.vmem %s34_s19, 128  ;;  %p312_p4 = scmp.lt.s32.totalorder %s34_s19, %s34_s19 }
   0xd   :  { %p308_p3 = scmp.ne.s32.totalorder %s34_s19, %s307_s29  ;;  %p313_p5 = scmp.lt.s32.totalorder %s307_s29, %s307_s29 }
   0xf   :  { %p314_p6 = por %p313_p5, %p312_p4 }
  0x11   :  { %p315_p7 = pnand %p314_p6, %p308_p3 }
  0x13   :  { %318 = shalt.err (!%p315_p7)
}
  0x14   :  { %s441_s30 = smov 64   ;;  %s442_s6 = smov 4  }
  0x15   :  { %39 = dma.hbm_to_vmem [thread:$0]  %s594_s1, 128, %s34_s19, [#allocation6], %s441_s30, %s441_s30, %s442_s6  }
  0x16   :  { %s319_s11 = scalar_lea.hbm %s593_s0, 128 }
  0x17   :  { %p320_p8 = scmp.ne.s32.totalorder %s593_s0, %s319_s11  ;;  %p323_p9 = scmp.lt.u32.totalorder %s319_s11, %s593_s0 }
  0x19   :  { %p325_p10 = pnand %p323_p9, %p320_p8 }
  0x1b   :  { %328 = shalt.err (!%p325_p10)
}
  0x1c   :  { %s329_s16 = scalar_lea.vmem %s477_s21, 128  ;;  %p334_p12 = scmp.lt.s32.totalorder %s477_s21, %s477_s21 }
  0x1d   :  { %p330_p11 = scmp.ne.s32.totalorder %s477_s21, %s329_s16  ;;  %p335_p13 = scmp.lt.s32.totalorder %s329_s16, %s329_s16 }
  0x1f   :  { %p336_p0 = por %p335_p13, %p334_p12 }
  0x21   :  { %p337_p1 = pnand %p336_p0, %p330_p11 }
  0x23   :  { %340 = shalt.err (!%p337_p1)
}
  0x24   :  { %27 = dma.hbm_to_vmem [thread:$0]  %s593_s0, 128, %s477_s21, [#allocation3], %s441_s30, %s441_s30, %s442_s6  }
  0x25   :  { %s443_s18 = smov [#allocation7]   ;;  %s444_s20 = smov [#allocation8]  }
  0x26   :  { %s45_s19 = sshll.u32 %s443_s18, 4  ;;  %s57_s22 = sshll.u32 %s444_s20, 4  ;;  %s46_s19 = int_to_ptr.vmem [resolvable:$true] %s45_s19  ;;  %s514_s22 = int_to_ptr.vmem [resolvable:$true] %s57_s22 }
  0x27   :  { %s341_s25 = scalar_lea.hbm %s595_s2, 256 }
  0x28   :  { %p342_p2 = scmp.ne.s32.totalorder %s595_s2, %s341_s25  ;;  %p345_p3 = scmp.lt.u32.totalorder %s341_s25, %s595_s2 }
  0x2a   :  { %p347_p4 = pnand %p345_p3, %p342_p2 }
  0x2c   :  { %350 = shalt.err (!%p347_p4)
}
  0x2d   :  { %s351_s0 = scalar_lea.vmem %s46_s19, 256  ;;  %p356_p6 = scmp.lt.s32.totalorder %s46_s19, %s46_s19 }
  0x2e   :  { %p352_p5 = scmp.ne.s32.totalorder %s46_s19, %s351_s0  ;;  %p357_p7 = scmp.lt.s32.totalorder %s351_s0, %s351_s0 }
  0x30   :  { %p358_p8 = por %p357_p7, %p356_p6 }
  0x32   :  { %p359_p9 = pnand %p358_p8, %p352_p5 }
  0x34   :  { %362 = shalt.err (!%p359_p9)
}
  0x35   :  { %51 = dma.hbm_to_vmem [thread:$0]  %s595_s2, 256, %s46_s19, [#allocation6], %s441_s30, %s441_s30, %s442_s6  }
  0x36   :  { %s363_s10 = scalar_lea.hbm %s596_s3, 256 }
  0x37   :  { %p364_p10 = scmp.ne.s32.totalorder %s596_s3, %s363_s10  ;;  %p367_p11 = scmp.lt.u32.totalorder %s363_s10, %s596_s3 }
  0x39   :  { %p369_p12 = pnand %p367_p11, %p364_p10 }
  0x3b   :  { %372 = shalt.err (!%p369_p12)
}
  0x3c   :  { %s373_s15 = scalar_lea.vmem %s514_s22, 256  ;;  %p378_p0 = scmp.lt.s32.totalorder %s514_s22, %s514_s22 }
  0x3d   :  { %p374_p13 = scmp.ne.s32.totalorder %s514_s22, %s373_s15  ;;  %p379_p1 = scmp.lt.s32.totalorder %s373_s15, %s373_s15 }
  0x3f   :  { %p380_p2 = por %p379_p1, %p378_p0 }
  0x41   :  { %p381_p3 = pnand %p380_p2, %p374_p13 }
  0x43   :  { %384 = shalt.err (!%p381_p3)
}
  0x44   :  { %63 = dma.hbm_to_vmem [thread:$0]  %s596_s3, 256, %s514_s22, [#allocation9], %s441_s30, %s441_s30, %s442_s6  }
  0x45   :  { %429 = dma.done.wait [#allocation3], 128  }
  0x46   :  { %430 = vsyncadd [#allocation3], 4294967168 }
  0x47   :  { %431 = dma.done.wait [#allocation6], 384  }
  0x48   :  { %432 = vsyncadd [#allocation6], 4294966912 }
  0x49   :  { %433 = dma.done.wait [#allocation9], 256  }
  0x4a   :  { %434 = vsyncadd [#allocation9], 4294967040  ;;  %v273_v0 = vld [vmem:[#allocation2] ss:$0 sm:$0xff]  ;;  %v275_v1 = vld [vmem:[#allocation5] ss:$0 sm:$0xff] }
  0x4b   :  { %v551_v2 = vld [vmem:[#allocation7] sm:$0xf]  ;;  %v81_v3 = vld [vmem:[#allocation8] sm:$0xf]  ;;  %v279_v6 = vld [vmem:[#allocation5 + $0x1] ss:$0 sm:$0xff] }
  0x4c   :  { %v90_v4 = vmul.f32 %v273_v0, %v551_v2  ;;  %v277_v5 = vld [vmem:[#allocation2 + $0x1] ss:$0 sm:$0xff]  ;;  %v108_v7 = vmul.f32 %v275_v1, %v551_v2  ;;  %v100_v8 = vmul.f32 %v275_v1, %v81_v3  ;;  %v555_v9 = vld [vmem:[#allocation7 + $0x4] sm:$0xf]  ;;  %v121_v10 = vld [vmem:[#allocation8 + $0x4] sm:$0xf]  ;;  %v106_v12 = vmul.f32 %v273_v0, %v81_v3 }
  0x4d   :  { %v281_v11 = vld [vmem:[#allocation2 + $0x2] ss:$0 sm:$0xff]  ;;  %v130_v13 = vmul.f32 %v277_v5, %v555_v9  ;;  %v140_v14 = vmul.f32 %v279_v6, %v121_v10  ;;  %v283_v15 = vld [vmem:[#allocation5 + $0x2] ss:$0 sm:$0xff]  ;;  %v159_v16 = vld [vmem:[#allocation7 + $0x8] sm:$0xf]  ;;  %v146_v18 = vmul.f32 %v277_v5, %v121_v10  ;;  %v148_v19 = vmul.f32 %v279_v6, %v555_v9 }
  0x4e   :  { %v161_v17 = vld [vmem:[#allocation8 + $0x8] sm:$0xf]  ;;  %v102_v20 = vsub.f32 %v90_v4, %v100_v8  ;;  %v170_v21 = vmul.f32 %v281_v11, %v159_v16  ;;  %v285_v23 = vld [vmem:[#allocation2 + $0x3] ss:$0 sm:$0xff]  ;;  %v199_v25 = vld [vmem:[#allocation7 + $0xc] sm:$0xf]  ;;  %v110_v26 = vadd.f32 %v108_v7, %v106_v12  ;;  %v188_v57 = vmul.f32 %v283_v15, %v159_v16 }
  0x4f   :  { %v180_v22 = vmul.f32 %v283_v15, %v161_v17  ;;  %v287_v24 = vld [vmem:[#allocation5 + $0x3] ss:$0 sm:$0xff]  ;;  %v142_v27 = vsub.f32 %v130_v13, %v140_v14  ;;  %v201_v28 = vld [vmem:[#allocation8 + $0xc] sm:$0xf]  ;;  %v210_v29 = vmul.f32 %v285_v23, %v199_v25  ;;  %v274_v30 = vld [vmem:[#allocation2 + $0x4] ss:$0 sm:$0xff]  ;;  %v150_v32 = vadd.f32 %v148_v19, %v146_v18 }
  0x50   :  { %v276_v31 = vld [vmem:[#allocation5 + $0x4] ss:$0 sm:$0xff]  ;;  %v186_v33 = vmul.f32 %v281_v11, %v161_v17  ;;  %v220_v35 = vmul.f32 %v287_v24, %v201_v28  ;;  %v91_v36 = vmul.f32 %v274_v30, %v551_v2  ;;  %v278_v38 = vld [vmem:[#allocation2 + $0x5] ss:$0 sm:$0xff]  ;;  %v280_v39 = vld [vmem:[#allocation5 + $0x5] ss:$0 sm:$0xff]  ;;  %v226_v58 = vmul.f32 %v285_v23, %v201_v28 }
  0x51   :  { %v182_v34 = vsub.f32 %v170_v21, %v180_v22  ;;  %v101_v37 = vmul.f32 %v276_v31, %v81_v3  ;;  %v282_v40 = vld [vmem:[#allocation2 + $0x6] ss:$0 sm:$0xff]  ;;  %v144_v41 = vadd.f32 %v142_v27, %v102_v20  ;;  %v131_v42 = vmul.f32 %v278_v38, %v555_v9  ;;  %v284_v44 = vld [vmem:[#allocation5 + $0x6] ss:$0 sm:$0xff]  ;;  %v286_v46 = vld [vmem:[#allocation2 + $0x7] ss:$0 sm:$0xff] }
  0x52   :  { %v141_v43 = vmul.f32 %v280_v39, %v121_v10  ;;  %v171_v45 = vmul.f32 %v282_v40, %v159_v16  ;;  %v288_v47 = vld [vmem:[#allocation5 + $0x7] ss:$0 sm:$0xff]  ;;  %v222_v48 = vsub.f32 %v210_v29, %v220_v35  ;;  %v181_v50 = vmul.f32 %v284_v44, %v161_v17  ;;  %s445_s3 = smov [#allocation10]   ;;  %s446_s17 = smov [#allocation11]  }
  0x53   :  { %v103_v49 = vsub.f32 %v91_v36, %v101_v37  ;;  %v211_v51 = vmul.f32 %v286_v46, %v199_v25  ;;  %v184_v52 = vadd.f32 %v182_v34, %v144_v41  ;;  %v221_v54 = vmul.f32 %v288_v47, %v201_v28  ;;  %s243_s1 = sshll.u32 %s445_s3, 4  ;;  %s255_s18 = sshll.u32 %s446_s17, 4  ;;  %s244_s1 = int_to_ptr.vmem [resolvable:$true] %s243_s1  ;;  %s256_s18 = int_to_ptr.vmem [resolvable:$true] %s255_s18 }
  0x54   :  { %v143_v53 = vsub.f32 %v131_v42, %v141_v43  ;;  %v152_v55 = vadd.f32 %v150_v32, %v110_v26  ;;  %v183_v56 = vsub.f32 %v171_v45, %v181_v50  ;;  %v228_v59 = vmul.f32 %v287_v24, %v199_v25  ;;  %s385_s19 = scalar_lea.vmem %s244_s1, 128  ;;  %p390_p5 = scmp.lt.s32.totalorder %s244_s1, %s244_s1 }
  0x55   :  { %v224_v60 = vadd.f32 %v222_v48, %v184_v52  ;;  %v223_v62 = vsub.f32 %v211_v51, %v221_v54  ;;  %v107_v63 = vmul.f32 %v274_v30, %v81_v3  ;;  %v190_v0 = vadd.f32 %v188_v57, %v186_v33  ;;  %p386_p4 = scmp.ne.s32.totalorder %s244_s1, %s385_s19  ;;  %p391_p6 = scmp.lt.s32.totalorder %s385_s19, %s385_s19 }
  0x56   :  { %v145_v61 = vadd.f32 %v143_v53, %v103_v49  ;;  %v230_v1 = vadd.f32 %v228_v59, %v226_v58  ;;  %v109_v4 = vmul.f32 %v276_v31, %v551_v2  ;;  %v147_v5 = vmul.f32 %v278_v38, %v121_v10 }
  0x57   :  { %234 = vst [vmem:[#allocation10] sm:$0xf] %v224_v60  ;;  %v149_v7 = vmul.f32 %v280_v39, %v555_v9  ;;  %v187_v8 = vmul.f32 %v282_v40, %v161_v17  ;;  %v189_v11 = vmul.f32 %v284_v44, %v159_v16  ;;  %v192_v12 = vadd.f32 %v190_v0, %v152_v55  ;;  %p392_p7 = por %p391_p6, %p390_p5 }
  0x58   :  { %v185_v6 = vadd.f32 %v183_v56, %v145_v61  ;;  %v111_v13 = vadd.f32 %v109_v4, %v107_v63  ;;  %v227_v14 = vmul.f32 %v286_v46, %v201_v28  ;;  %v229_v15 = vmul.f32 %v288_v47, %v199_v25 }
  0x59   :  { %v151_v19 = vadd.f32 %v149_v7, %v147_v5  ;;  %v191_v3 = vadd.f32 %v189_v11, %v187_v8  ;;  %v232_v20 = vadd.f32 %v230_v1, %v192_v12  ;;  %p393_p8 = pnand %p392_p7, %p386_p4 }
  0x5a   :  { %v225_v18 = vadd.f32 %v223_v62, %v185_v6  ;;  %v231_v10 = vadd.f32 %v229_v15, %v227_v14 }
  0x5b   :  { %v153_v2 = vadd.f32 %v151_v19, %v111_v13  ;;  %236 = vst [vmem:[#allocation11] sm:$0xf] %v232_v20 }
  0x5c   :  { %235 = vst [vmem:[#allocation10 + $0x4] sm:$0xf] %v225_v18 }
  0x5d   :  { %396 = shalt.err (!%p393_p8)
}
  0x5e   :  { %s397_s23 = scalar_lea.hbm %s597_s4, 128 }
  0x5f   :  { %p398_p9 = scmp.ne.s32.totalorder %s597_s4, %s397_s23  ;;  %p401_p10 = scmp.lt.u32.totalorder %s397_s23, %s597_s4 }
  0x61   :  { %p403_p11 = pnand %p401_p10, %p398_p9 }
  0x63   :  { %406 = shalt.err (!%p403_p11)
}
  0x64   :  { %249 = dma.vmem_to_hbm [thread:$0]  %s244_s1, 128, %s597_s4, [#allocation4], %s441_s30, %s441_s30, %s442_s6   ;;  %v193_v9 = vadd.f32 %v191_v3, %v153_v2 }
  0x65   :  { %s407_s0 = scalar_lea.vmem %s256_s18, 128  ;;  %p412_p13 = scmp.lt.s32.totalorder %s256_s18, %s256_s18 }
  0x66   :  { %v233_v16 = vadd.f32 %v231_v10, %v193_v9  ;;  %p408_p12 = scmp.ne.s32.totalorder %s256_s18, %s407_s0  ;;  %p413_p0 = scmp.lt.s32.totalorder %s407_s0, %s407_s0 }
  0x68   :  { %237 = vst [vmem:[#allocation11 + $0x4] sm:$0xf] %v233_v16  ;;  %p414_p1 = por %p413_p0, %p412_p13 }
  0x6a   :  { %p415_p2 = pnand %p414_p1, %p408_p12 }
  0x6c   :  { %418 = shalt.err (!%p415_p2)
}
  0x6d   :  { %s419_s8 = scalar_lea.hbm %s598_s5, 128 }
  0x6e   :  { %p420_p3 = scmp.ne.s32.totalorder %s598_s5, %s419_s8  ;;  %p423_p4 = scmp.lt.u32.totalorder %s419_s8, %s598_s5 }
  0x70   :  { %p425_p5 = pnand %p423_p4, %p420_p3 }
  0x72   :  { %428 = shalt.err (!%p425_p5)
}
  0x73   :  { %261 = dma.vmem_to_hbm [thread:$0]  %s256_s18, 128, %s598_s5, [#allocation12], %s441_s30, %s441_s30, %s442_s6  }
  0x74   :  { %435 = dma.done.wait [#allocation4], 128  }
  0x75   :  { %436 = vsyncadd [#allocation4], 4294967168 }
  0x76   :  { %437 = dma.done.wait [#allocation12], 128  }
  0x77   :  { %438 = vsyncadd [#allocation12], 4294967168 }
  0x78   :  { %268 = vsyncpa [#allocation3], 1 }
  0x79   :  { %269 = vsyncpa [#allocation6], 1 }
  0x7a   :  { %270 = vsyncpa [#allocation9], 1 }
  0x7b   :  { %271 = vsyncpa [#allocation4], 1 }
  0x7c   :  { %272 = vsyncpa [#allocation12], 1 }

</bundles_post_ra>
